<compile_context>
chip_gen: v7x
topology: tpu7x:2x2x1
jax: 0.10.0
libtpu: 0.0.40
codegen_flags: <defaults>
</compile_context>

<pallas_src>
import jax
import jax.numpy as jnp
from jax.experimental import pallas as pl
from jax.experimental.pallas import tpu as pltpu

_MIB = 1024 * 1024


def _round_up(a, b):
    return ((a + b - 1) // b) * b


def _vmem_limit_bytes():
    # Generation-aware VMEM budget with compiler-scratch headroom:
    # v7x: 64 MiB/core -> 56 MiB; v5e/v6e: 128 MiB -> 112 MiB.
    try:
        cap = pltpu.get_tpu_info().vmem_capacity_bytes
    except Exception:
        cap = 64 * _MIB
    return int(min(cap - 8 * _MIB, 112 * _MIB))


def _esm_out_kernel(x_ref, w_ref, b_ref, attn_ref, o_ref):
    # One MXU op per tile: (tm, nin) @ (nin, tn), f32 accumulation.
    y = jnp.dot(x_ref[...], w_ref[...], preferred_element_type=jnp.float32)
    # Fused epilogue: bias + attn residual + cast, single store.
    y = y + b_ref[...].astype(jnp.float32) + attn_ref[...].astype(jnp.float32)
    # Dropout(p=0.0) is the identity (inference / p == 0).
    # TODO(synk): training-mode dropout masking via pltpu.prng_seed / prng_random_bits.
    o_ref[...] = y.astype(o_ref.dtype)


def esm_out_layer(x, attn_scores, weight, bias, lora_A=None, lora_B=None,
                  alpha=1.0, *, block_m=512, block_n=2048, use_bf16=False):
    """x: (B, S, nin), attn_scores: (B, S, nout), weight: (nout, nin), bias: (nout,).

    lora_A: (nin, r), lora_B: (r, nout). Pass lora_A=lora_B=None for plain nn.Linear.
    """
    B, S, nin = x.shape
    nout = weight.shape[0]
    M = B * S

    x2 = x.reshape(M, nin)
    attn2 = attn_scores.reshape(M, nout)
    b2 = bias.reshape(1, nout)
    out_dtype = jnp.result_type(x.dtype, attn_scores.dtype)

    # Fold the Linear transpose and the rank-r LoRA path into ONE effective
    # (nin, nout) weight, computed once per call in f32 (tiny vs. the x stream):
    #   x @ W^T + b + alpha*(x @ A @ B)  ==  x @ (W^T + A @ (alpha*B)) + b
    w_eff = jnp.transpose(weight).astype(jnp.float32)
    if lora_A is not None and lora_B is not None:
        w_eff = w_eff + jnp.dot(
            lora_A.astype(jnp.float32),
            jnp.asarray(alpha, jnp.float32) * lora_B.astype(jnp.float32))
    param_dtype = jnp.bfloat16 if use_bf16 else jnp.result_type(x.dtype, weight.dtype)
    w_eff = w_eff.astype(param_dtype)
    if use_bf16:
        x2 = x2.astype(jnp.bfloat16)

    # Row tile: keep >= 512 rows when possible (near HBM roofline); clamp to the
    # 8-sublane granule for tiny inputs. No padding copies — Pallas masks the
    # partial tail block (grid via pl.cdiv).
    tm = min(block_m, _round_up(M, 8))
    grid_m = pl.cdiv(M, tm)

    # Output-column tile: full nout when it fits, otherwise 128-lane-aligned
    # tiles (bounds W residency on v7x, adds grid work for small M).
    tn = nout if nout <= block_n else block_n
    grid_n = pl.cdiv(nout, tn)

    # Resident operands (constant index_map along the whole grid) only need a
    # single VMEM buffer instead of the default double buffer.
    resident = grid_n == 1
    res_pipe = dict(pipeline_mode=pl.Buffered(1)) if resident else {}

    in_specs = [
        pl.BlockSpec((tm, nin), lambda i, j: (i, 0)),              # x: M-streamed
        pl.BlockSpec((nin, tn), lambda i, j: (0, j), **res_pipe),  # W_eff
        pl.BlockSpec((1, tn), lambda i, j: (0, j), **res_pipe),    # bias
        pl.BlockSpec((tm, tn), lambda i, j: (i, j)),               # attn residual
    ]
    out_specs = pl.BlockSpec((tm, tn), lambda i, j: (i, j))

    out2 = pl.pallas_call(
        _esm_out_kernel,
        out_shape=jax.ShapeDtypeStruct((M, nout), out_dtype),
        grid_spec=pltpu.PrefetchScalarGridSpec(
            num_scalar_prefetch=0,
            grid=(grid_m, grid_n),
            in_specs=in_specs,
            out_specs=out_specs,
        ),
        compiler_params=pltpu.CompilerParams(
            dimension_semantics=("parallel", "parallel"),
            vmem_limit_bytes=_vmem_limit_bytes()),
    )(x2, w_eff, b2, attn2)

    return out2.reshape(B, S, nout)


if __name__ == "__main__":
    # Small shapes consistent with the module's forward.
    batch, seq = 2, 8
    nin, nout = 32, 32
    lora_r = 8
    lora_alpha = 16.0

    key = jax.random.PRNGKey(0)
    kx, ka, kw, kb, kla, klb = jax.random.split(key, 6)

    x = jax.random.normal(kx, (batch, seq, nin), dtype=jnp.float32)
    attn_scores = jax.random.normal(ka, (batch, seq, nout), dtype=jnp.float32)

    # Parameter shapes mirror LoRALinear.__init__:
    #   nn.Linear: weight (nout, nin), bias (nout,)
    #   lora_A:    (nin, r) * 1/sqrt(r)
    #   lora_B:    (r, nout)  (module inits to zeros; use nonzero here so the
    #                          fused LoRA path is actually exercised)
    weight = jax.random.normal(kw, (nout, nin), dtype=jnp.float32) * 0.02
    bias = jax.random.normal(kb, (nout,), dtype=jnp.float32) * 0.02
    lora_A = jax.random.normal(kla, (nin, lora_r), dtype=jnp.float32) / jnp.sqrt(
        jnp.float32(lora_r))
    lora_B = jax.random.normal(klb, (lora_r, nout), dtype=jnp.float32) * 0.02

    out = esm_out_layer(x, attn_scores, weight, bias, lora_A, lora_B, lora_alpha)
    out = jax.block_until_ready(out)

    # Pure-JAX reference mirroring the PyTorch forward exactly.
    x2 = x.reshape(-1, nin)
    ref = x2 @ weight.T + bias
    ref = ref + lora_alpha * ((x2 @ lora_A) @ lora_B)
    ref = ref.reshape(batch, seq, nout) + attn_scores

    assert out.shape == (batch, seq, nout)
    assert jnp.allclose(out, ref, atol=2e-5, rtol=2e-5), "mismatch vs reference"
    print("KERNEL_OK")
</pallas_src>

<mosaic_0001>
module attributes {stable_mosaic.version = 11 : i64} {
  func.func @_esm_out_kernel(%arg0: i32, %arg1: i32, %arg2: memref<16x32xf32, #tpu.memory_space<vmem>>, %arg3: memref<32x32xf32, #tpu.memory_space<vmem>>, %arg4: memref<1x32xf32, #tpu.memory_space<vmem>>, %arg5: memref<16x32xf32, #tpu.memory_space<vmem>>, %arg6: memref<16x32xf32, #tpu.memory_space<vmem>>) attributes {dimension_semantics = [#tpu.dimension_semantics<parallel>, #tpu.dimension_semantics<parallel>], iteration_bounds = array<i64: 1, 1>, scalar_prefetch = 0 : i64, scratch_operands = 0 : i64, tpu.core_type = #tpu.core_type<tc>, window_params = [{transform_indices = @transform_0, window_bounds = array<i64: 16, 32>}, {pipeline_mode = #tpu.pipeline_mode<synchronous>, transform_indices = @transform_1, window_bounds = array<i64: 32, 32>}, {pipeline_mode = #tpu.pipeline_mode<synchronous>, transform_indices = @transform_2, window_bounds = array<i64: 1, 32>}, {transform_indices = @transform_3, window_bounds = array<i64: 16, 32>}, {transform_indices = @transform_4, window_bounds = array<i64: 16, 32>}]} {
    %c0 = arith.constant 0 : index
    %c0_0 = arith.constant 0 : index
    %0 = vector.load %arg2[%c0, %c0_0] : memref<16x32xf32, #tpu.memory_space<vmem>>, vector<16x32xf32>
    %c0_1 = arith.constant 0 : index
    %c0_2 = arith.constant 0 : index
    %1 = vector.load %arg3[%c0_1, %c0_2] : memref<32x32xf32, #tpu.memory_space<vmem>>, vector<32x32xf32>
    %cst = arith.constant dense<0.000000e+00> : vector<16x32xf32>
    %2 = tpu.matmul %0, %1, %cst {dimension_numbers = #tpu.dot_dimension_numbers<[1], [0], [0], [1], [0, 0, 1, 1], [], []>} : vector<16x32xf32>, vector<32x32xf32>, vector<16x32xf32> -> vector<16x32xf32>
    %c0_3 = arith.constant 0 : index
    %c0_4 = arith.constant 0 : index
    %3 = vector.load %arg4[%c0_3, %c0_4] : memref<1x32xf32, #tpu.memory_space<vmem>>, vector<1x32xf32>
    %4 = vector.broadcast %3 : vector<1x32xf32> to vector<16x32xf32>
    %5 = arith.addf %2, %4 : vector<16x32xf32>
    %c0_5 = arith.constant 0 : index
    %c0_6 = arith.constant 0 : index
    %6 = vector.load %arg5[%c0_5, %c0_6] : memref<16x32xf32, #tpu.memory_space<vmem>>, vector<16x32xf32>
    %7 = arith.addf %5, %6 : vector<16x32xf32>
    %c0_7 = arith.constant 0 : index
    %c0_8 = arith.constant 0 : index
    %8 = vector.load %arg6[%c0_7, %c0_8] : memref<16x32xf32, #tpu.memory_space<vmem>>, vector<16x32xf32>
    tpu.vector_store %arg6[%c0_7, %c0_8], %7 {strides = array<i32>} : memref<16x32xf32, #tpu.memory_space<vmem>>, vector<16x32xf32>,
    return
  }
  func.func @transform_0(%arg0: i32, %arg1: i32) -> (i32, i32) {
    %c0_i32 = arith.constant 0 : i32
    %c0_i32_0 = arith.constant 0 : i32
    return %arg0, %c0_i32 : i32, i32
  }
  func.func @transform_1(%arg0: i32, %arg1: i32) -> (i32, i32) {
    %c0_i32 = arith.constant 0 : i32
    %c0_i32_0 = arith.constant 0 : i32
    return %c0_i32, %arg1 : i32, i32
  }
  func.func @transform_2(%arg0: i32, %arg1: i32) -> (i32, i32) {
    %c0_i32 = arith.constant 0 : i32
    %c0_i32_0 = arith.constant 0 : i32
    return %c0_i32, %arg1 : i32, i32
  }
  func.func @transform_3(%arg0: i32, %arg1: i32) -> (i32, i32) {
    %c0_i32 = arith.constant 0 : i32
    return %arg0, %arg1 : i32, i32
  }
  func.func @transform_4(%arg0: i32, %arg1: i32) -> (i32, i32) {
    %c0_i32 = arith.constant 0 : i32
    return %arg0, %arg1 : i32, i32
  }
}

</mosaic_0001>

<bundles_post_ra>
// kernel: tpu_custom_call.1
= control target key start
LH: loop header
LB: loop body
LE: loop exit
PB: predicated region body
PF: predicated region fallthrough
CT: control target
= control target key end

     0   :  { %9 = vsyncpa [#allocation3], 0  ;;  %s411_s0 = inlined_call_operand.hbm [shape: f32[16,32], index: 0, kind: input, shape index: {}]   ;;  %s412_s1 = inlined_call_operand.hbm [shape: f32[32,32], index: 1, kind: input, shape index: {}]   ;;  %s413_s2 = inlined_call_operand.vmem [shape: f32[1,32], index: 2, kind: input, shape index: {}]   ;;  %s414_s3 = inlined_call_operand.hbm [shape: f32[16,32], index: 3, kind: input, shape index: {}]   ;;  %s415_s4 = inlined_call_operand.hbm [shape: f32[16,32], index: 4, kind: output, shape index: {}]  }
   0x1   :  { %10 = vsyncpa [#allocation6], 0 }
   0x2   :  { %11 = vsyncpa [#allocation4], 0  ;;  %s306_s15 = smov [#allocation5]   ;;  %s307_s17 = smov [#allocation2]  }
   0x3   :  { %s29_s16 = sshll.u32 %s306_s15, 4  ;;  %s17_s18 = sshll.u32 %s307_s17, 4  ;;  %s30_s16 = int_to_ptr.vmem [resolvable:$true] %s29_s16  ;;  %s337_s18 = int_to_ptr.vmem [resolvable:$true] %s17_s18 }
   0x4   :  { %s212_s21 = scalar_lea.hbm %s412_s1, 512 }
   0x5   :  { %p213_p0 = scmp.ne.s32.totalorder %s412_s1, %s212_s21  ;;  %p216_p1 = scmp.lt.u32.totalorder %s212_s21, %s412_s1 }
   0x7   :  { %p218_p2 = pnand %p216_p1, %p213_p0 }
   0x9   :  { %221 = shalt.err (!%p218_p2)
}
   0xa   :  { %s222_s26 = scalar_lea.vmem %s30_s16, 512  ;;  %p227_p4 = scmp.lt.s32.totalorder %s30_s16, %s30_s16 }
   0xb   :  { %p223_p3 = scmp.ne.s32.totalorder %s30_s16, %s222_s26  ;;  %p228_p5 = scmp.lt.s32.totalorder %s222_s26, %s222_s26 }
   0xd   :  { %p229_p6 = por %p228_p5, %p227_p4 }
   0xf   :  { %p230_p7 = pnand %p229_p6, %p223_p3 }
  0x11   :  { %233 = shalt.err (!%p230_p7)
}
  0x12   :  { %s308_s27 = smov 128   ;;  %s309_s28 = smov 8  }
  0x13   :  { %35 = dma.hbm_to_vmem [thread:$0]  %s412_s1, 512, %s30_s16, [#allocation6], %s308_s27, %s308_s27, %s309_s28  }
  0x14   :  { %s234_s7 = scalar_lea.hbm %s411_s0, 256 }
  0x15   :  { %p235_p8 = scmp.ne.s32.totalorder %s411_s0, %s234_s7  ;;  %p238_p9 = scmp.lt.u32.totalorder %s234_s7, %s411_s0 }
  0x17   :  { %p240_p10 = pnand %p238_p9, %p235_p8 }
  0x19   :  { %243 = shalt.err (!%p240_p10)
}
  0x1a   :  { %s244_s12 = scalar_lea.vmem %s337_s18, 256  ;;  %p249_p12 = scmp.lt.s32.totalorder %s337_s18, %s337_s18 }
  0x1b   :  { %p245_p11 = scmp.ne.s32.totalorder %s337_s18, %s244_s12  ;;  %p250_p13 = scmp.lt.s32.totalorder %s244_s12, %s244_s12 }
  0x1d   :  { %p251_p0 = por %p250_p13, %p249_p12 }
  0x1f   :  { %p252_p1 = pnand %p251_p0, %p245_p11 }
  0x21   :  { %255 = shalt.err (!%p252_p1)
}
  0x22   :  { %23 = dma.hbm_to_vmem [thread:$0]  %s411_s0, 256, %s337_s18, [#allocation3], %s308_s27, %s308_s27, %s309_s28  }
  0x23   :  { %s310_s14 = smov [#allocation7]   ;;  %s256_s19 = scalar_lea.hbm %s414_s3, 256 }
  0x24   :  { %s43_s15 = sshll.u32 %s310_s14, 4  ;;  %p257_p2 = scmp.ne.s32.totalorder %s414_s3, %s256_s19  ;;  %s44_s15 = int_to_ptr.vmem [resolvable:$true] %s43_s15 }
  0x25   :  { %p260_p3 = scmp.lt.u32.totalorder %s256_s19, %s414_s3 }
  0x27   :  { %p262_p4 = pnand %p260_p3, %p257_p2 }
  0x29   :  { %265 = shalt.err (!%p262_p4)
}
  0x2a   :  { %s266_s24 = scalar_lea.vmem %s44_s15, 256  ;;  %p271_p6 = scmp.lt.s32.totalorder %s44_s15, %s44_s15 }
  0x2b   :  { %p267_p5 = scmp.ne.s32.totalorder %s44_s15, %s266_s24  ;;  %p272_p7 = scmp.lt.s32.totalorder %s266_s24, %s266_s24 }
  0x2d   :  { %p273_p8 = por %p272_p7, %p271_p6 }
  0x2f   :  { %p274_p9 = pnand %p273_p8, %p267_p5 }
  0x31   :  { %277 = shalt.err (!%p274_p9)
}
  0x32   :  { %49 = dma.hbm_to_vmem [thread:$0]  %s414_s3, 256, %s44_s15, [#allocation6], %s308_s27, %s308_s27, %s309_s28  }
  0x33   :  { %300 = dma.done.wait [#allocation3], 256  }
  0x34   :  { %301 = vsyncadd [#allocation3], 4294967040 }
  0x35   :  { %302 = dma.done.wait [#allocation6], 768  }
  0x36   :  { %303 = vsyncadd [#allocation6], 4294966528  ;;  %vm72_vm0 = vcmask 261120   ;;  %v61_v0 = vld [vmem:[#allocation5] sm:$0xff]  ;;  %v62_v1 = vld [vmem:[#allocation5 + $0x8] sm:$0xff]  ;;  %s311_s26 = smov [#allocation8]  }
  0x37   :  { %v63_v2 = vld [vmem:[#allocation5 + $0x10] sm:$0xff]  ;;  %v198_v3 = vpack.c.bf16 %v62_v1, %v61_v0  ;;  %v64_v4 = vld [vmem:[#allocation5 + $0x18] sm:$0xff]  ;;  %v155_v10 = vld [vmem:[#allocation7 + $0x8] sm:$0xff]  ;;  %s165_s29 = sshll.u32 %s311_s26, 4  ;;  %s166_s29 = int_to_ptr.vmem [resolvable:$true] %s165_s29 }
  0x38   :  { %v59_v5 = vld [vmem:[#allocation2] sm:$0xff]  ;;  %v202_v6 = vpack.c.bf16 %v64_v4, %v63_v2  ;;  %v60_v7 = vld [vmem:[#allocation2 + $0x8] sm:$0xff]  ;;  %v154_v13 = vld [vmem:[#allocation7] sm:$0xff]  ;;  %s278_s30 = scalar_lea.vmem %s166_s29, 256  ;;  %p283_p11 = scmp.lt.s32.totalorder %s166_s29, %s166_s29 }
  0x39   :  { %195 = vmatprep.mubr.msk.f32.mxu0 %vm72_vm0, %v59_v5  ;;  %199 = vmatprep.subr.bf16.mxu0 %v198_v3  ;;  %v178_v8 = vld [vmem:[%s413_s2] ss:$0 sm:$0xff]  ;;  %p279_p10 = scmp.ne.s32.totalorder %s166_s29, %s278_s30  ;;  %p284_p12 = scmp.lt.s32.totalorder %s278_s30, %s278_s30 }
  0x3a   :  { %201 = vmatpush3.bf16.msra.mxu0 %v198_v3 }
  0x3b   :  { %203 = vmatprep.subr.bf16.mxu0 %v202_v6  ;;  %p285_p13 = por %p284_p12, %p283_p11 }
  0x3d   :  { %p286_p0 = pnand %p285_p13, %p279_p10 }
  0x3e   :  { %205 = vmatpush3.bf16.msra.mxu0 %v202_v6 }
  0x41   :  { %196 = vmatmul.mubr.msk.f32.vlgmr.msra.gmra.mrb[0].mxu0 %vm72_vm0, %v60_v7 }
 0x114   :  { %v197_v9 = vpop.f32.mrb[0].mxu0 }
 0x115   :  { %v151_v11 = vadd.f32 %v197_v9, %v178_v8  ;;  %v145_v12 = vpop.f32.mrb[1].mxu0 }
 0x116   :  { %v146_v14 = vadd.f32 %v178_v8, %v145_v12 }
 0x117   :  { %v157_v15 = vadd.f32 %v155_v10, %v151_v11 }
 0x118   :  { %v156_v16 = vadd.f32 %v154_v13, %v146_v14 }
 0x119   :  { %159 = vst.msk [vmem:[#allocation8 + $0x8] sm:$0xff] %vm72_vm0, %v157_v15 }
 0x11a   :  { %158 = vst.msk [vmem:[#allocation8] sm:$0xff] %vm72_vm0, %v156_v16 }
 0x11b   :  { %289 = shalt.err (!%p286_p0)
}
 0x11c   :  { %s290_s6 = scalar_lea.hbm %s415_s4, 256 }
 0x11d   :  { %p291_p1 = scmp.ne.s32.totalorder %s415_s4, %s290_s6  ;;  %p294_p2 = scmp.lt.u32.totalorder %s290_s6, %s415_s4 }
 0x11f   :  { %p296_p3 = pnand %p294_p2, %p291_p1 }
 0x121   :  { %299 = shalt.err (!%p296_p3)
}
 0x122   :  { %171 = dma.vmem_to_hbm [thread:$0]  %s166_s29, 256, %s415_s4, [#allocation4], %s308_s27, %s308_s27, %s309_s28  }
 0x123   :  { %304 = dma.done.wait [#allocation4], 256  }
 0x124   :  { %305 = vsyncadd [#allocation4], 4294967040 }
 0x125   :  { %175 = vsyncpa [#allocation3], 1 }
 0x126   :  { %176 = vsyncpa [#allocation6], 1 }
 0x127   :  { %177 = vsyncpa [#allocation4], 1 }

</bundles_post_ra>
